<compile_context>
chip_gen: v5e
topology: v5e:2x2
jax: 0.10.0
libtpu: 0.0.40
codegen_flags: <defaults>
</compile_context>

<pallas_src>
import functools

import jax
import jax.numpy as jnp
from jax.experimental import pallas as pl
from jax.experimental.pallas import tpu as pltpu

_LANES = 1024          # lane-dense last dim (multiple of 128)
_MAX_TILE_ROWS = 512   # 512 x 1024 f32 tile = 2 MiB


def _shrinkage_loss_kernel(x_ref, t_ref, o_ref, *, a, c):
    x = x_ref[...].astype(jnp.float32)
    t = t_ref[...].astype(jnp.float32)
    l = x - t
    loss = jnp.exp(t) * (l * l) / (1.0 + jnp.exp(a * (c - l)))
    o_ref[...] = loss.astype(o_ref.dtype)


def _shrinkage_loss_sum_kernel(x_ref, t_ref, acc_ref, *, a, c):
    # Fused-sum path: accumulate per-tile sums into a resident (1,1) f32 output.
    @pl.when(pl.program_id(0) == 0)
    def _():
        acc_ref[...] = jnp.zeros_like(acc_ref)

    x = x_ref[...].astype(jnp.float32)
    t = t_ref[...].astype(jnp.float32)
    l = x - t
    loss = jnp.exp(t) * (l * l) / (1.0 + jnp.exp(a * (c - l)))
    acc_ref[...] += jnp.sum(loss, keepdims=True)


def _flatten_pad(x, padded_len):
    flat = x.reshape(-1)
    pad = padded_len - flat.shape[0]
    if pad:
        flat = jnp.pad(flat, (0, pad))
    return flat.reshape(-1, _LANES)


def shrinkage_loss(inputs, targets, *, a=5.0, c=0.2, reduce=False):
    """JAX/Pallas equivalent of ShrinkageLoss(a, c, reduce)(inputs, targets)."""
    assert inputs.shape == targets.shape
    n = inputs.size

    rows = pl.cdiv(n, _LANES)
    tile_rows = min(_MAX_TILE_ROWS, ((rows + 7) // 8) * 8)   # sublane-aligned
    num_tiles = pl.cdiv(rows, tile_rows)
    rows_padded = num_tiles * tile_rows
    padded_len = rows_padded * _LANES

    x2 = _flatten_pad(inputs, padded_len)
    t2 = _flatten_pad(targets, padded_len)

    in_specs = [
        pl.BlockSpec((tile_rows, _LANES), lambda i: (i, 0)),
        pl.BlockSpec((tile_rows, _LANES), lambda i: (i, 0)),
    ]

    if reduce:
        kernel = functools.partial(_shrinkage_loss_sum_kernel, a=a, c=c)
        acc = pl.pallas_call(
            kernel,
            out_shape=jax.ShapeDtypeStruct((1, 1), jnp.float32),
            grid=(num_tiles,),
            in_specs=in_specs,
            out_specs=pl.BlockSpec((1, 1), lambda i: (0, 0)),
            compiler_params=pltpu.CompilerParams(
                dimension_semantics=("arbitrary",),
                vmem_limit_bytes=32 * 1024 * 1024,
            ),
        )(x2, t2)
        # Padded tail contributes exactly 0; divide by the real element count.
        return (acc[0, 0] / n).astype(inputs.dtype)

    kernel = functools.partial(_shrinkage_loss_kernel, a=a, c=c)
    out2 = pl.pallas_call(
        kernel,
        out_shape=jax.ShapeDtypeStruct((rows_padded, _LANES), inputs.dtype),
        grid=(num_tiles,),
        in_specs=in_specs,
        out_specs=pl.BlockSpec((tile_rows, _LANES), lambda i: (i, 0)),
        compiler_params=pltpu.CompilerParams(
            dimension_semantics=("parallel",),
            vmem_limit_bytes=32 * 1024 * 1024,
        ),
    )(x2, t2)
    return out2.reshape(-1)[:n].reshape(inputs.shape)


def _shrinkage_loss_ref(inputs, targets, *, a=5.0, c=0.2, reduce=False):
    l = inputs - targets
    loss = jnp.exp(targets) * (l * l) / (1.0 + jnp.exp(a * (c - l)))
    return jnp.mean(loss) if reduce else loss


if __name__ == "__main__":
    key = jax.random.PRNGKey(0)
    k1, k2 = jax.random.split(key)
    B, C, H, W = 2, 4, 16, 16
    inputs = jax.random.uniform(k1, (B, C, H, W), jnp.float32, minval=-1.0, maxval=1.0)
    targets = jax.random.uniform(k2, (B, C, H, W), jnp.float32, minval=-1.0, maxval=1.0)

    # elementwise path (reduce=False, module default)
    out = jax.block_until_ready(shrinkage_loss(inputs, targets))
    ref = _shrinkage_loss_ref(inputs, targets)
    assert out.shape == ref.shape and out.dtype == ref.dtype
    assert jnp.allclose(out, ref, atol=1e-5, rtol=1e-5), "elementwise mismatch"

    # fused-mean path (reduce=True)
    out_r = jax.block_until_ready(shrinkage_loss(inputs, targets, reduce=True))
    ref_r = _shrinkage_loss_ref(inputs, targets, reduce=True)
    assert jnp.allclose(out_r, ref_r, atol=1e-6, rtol=1e-5), "reduced mismatch"

    print("KERNEL_OK")
</pallas_src>

<mosaic_0001>
module attributes {stable_mosaic.version = 11 : i64} {
  func.func @_shrinkage_loss_kernel(%arg0: i32, %arg1: memref<8x1024xf32, #tpu.memory_space<vmem>>, %arg2: memref<8x1024xf32, #tpu.memory_space<vmem>>, %arg3: memref<8x1024xf32, #tpu.memory_space<vmem>>) attributes {dimension_semantics = [#tpu.dimension_semantics<parallel>], iteration_bounds = array<i64: 1>, scalar_prefetch = 0 : i64, scratch_operands = 0 : i64, tpu.core_type = #tpu.core_type<tc>, window_params = [{transform_indices = @transform_0, window_bounds = array<i64: 8, 1024>}, {transform_indices = @transform_1, window_bounds = array<i64: 8, 1024>}, {transform_indices = @transform_2, window_bounds = array<i64: 8, 1024>}]} {
    %c0 = arith.constant 0 : index
    %c0_0 = arith.constant 0 : index
    %0 = vector.load %arg1[%c0, %c0_0] : memref<8x1024xf32, #tpu.memory_space<vmem>>, vector<8x1024xf32>
    %c0_1 = arith.constant 0 : index
    %c0_2 = arith.constant 0 : index
    %1 = vector.load %arg2[%c0_1, %c0_2] : memref<8x1024xf32, #tpu.memory_space<vmem>>, vector<8x1024xf32>
    %2 = arith.subf %0, %1 : vector<8x1024xf32>
    %3 = math.exp %1 : vector<8x1024xf32>
    %4 = arith.mulf %2, %2 : vector<8x1024xf32>
    %5 = arith.mulf %3, %4 : vector<8x1024xf32>
    %cst = arith.constant 2.000000e-01 : f32
    %6 = vector.broadcast %cst : f32 to vector<8x1024xf32>
    %7 = arith.subf %6, %2 : vector<8x1024xf32>
    %cst_3 = arith.constant 5.000000e+00 : f32
    %8 = vector.broadcast %cst_3 : f32 to vector<8x1024xf32>
    %9 = arith.mulf %8, %7 : vector<8x1024xf32>
    %10 = math.exp %9 : vector<8x1024xf32>
    %cst_4 = arith.constant 1.000000e+00 : f32
    %11 = vector.broadcast %cst_4 : f32 to vector<8x1024xf32>
    %12 = arith.addf %11, %10 : vector<8x1024xf32>
    %13 = arith.divf %5, %12 : vector<8x1024xf32>
    %c0_5 = arith.constant 0 : index
    %c0_6 = arith.constant 0 : index
    %14 = vector.load %arg3[%c0_5, %c0_6] : memref<8x1024xf32, #tpu.memory_space<vmem>>, vector<8x1024xf32>
    tpu.vector_store %arg3[%c0_5, %c0_6], %13 {strides = array<i32>} : memref<8x1024xf32, #tpu.memory_space<vmem>>, vector<8x1024xf32>,
    return
  }
  func.func @transform_0(%arg0: i32) -> (i32, i32) {
    %c0_i32 = arith.constant 0 : i32
    %c0_i32_0 = arith.constant 0 : i32
    return %arg0, %c0_i32 : i32, i32
  }
  func.func @transform_1(%arg0: i32) -> (i32, i32) {
    %c0_i32 = arith.constant 0 : i32
    %c0_i32_0 = arith.constant 0 : i32
    return %arg0, %c0_i32 : i32, i32
  }
  func.func @transform_2(%arg0: i32) -> (i32, i32) {
    %c0_i32 = arith.constant 0 : i32
    %c0_i32_0 = arith.constant 0 : i32
    return %arg0, %c0_i32 : i32, i32
  }
}

</mosaic_0001>

<bundles_post_ra>
// kernel: tpu_custom_call.1
= control target key start
LH: loop header
LB: loop body
LE: loop exit
PB: predicated region body
PF: predicated region fallthrough
CT: control target
= control target key end

     0   :  { %7 = vsyncpa [#allocation3], 0  ;;  %s598_s0 = inlined_call_operand.hbm [shape: f32[8,1024], index: 0, kind: input, shape index: {}]   ;;  %s599_s1 = inlined_call_operand.hbm [shape: f32[8,1024], index: 1, kind: input, shape index: {}]   ;;  %s600_s2 = inlined_call_operand.hbm [shape: f32[8,1024], index: 2, kind: output, shape index: {}]  }
   0x1   :  { %8 = vsyncpa [#allocation6], 0 }
   0x2   :  { %9 = vsyncpa [#allocation4], 0  ;;  %s15_s11 = sshll.u32 %s598_s0, 4  ;;  %s411_s12 = smov [#allocation2]   ;;  %s16_s11 = int_to_ptr.hbm [resolvable:$true] %s15_s11 }
   0x3   :  { %s17_s13 = sshll.u32 %s411_s12, 4  ;;  %s26_s16 = sshll.u32 %s599_s1, 4  ;;  %s18_s13 = int_to_ptr.vmem [resolvable:$true] %s17_s13  ;;  %s27_s16 = int_to_ptr.hbm [resolvable:$true] %s26_s16 }
   0x4   :  { %20 = dma.hbm_to_vmem [thread:$0]  %s16_s11, 1024, %s18_s13, [#allocation3]  }
   0x5   :  { %s412_s17 = smov [#allocation5]  }
   0x6   :  { %s28_s18 = sshll.u32 %s412_s17, 4  ;;  %s29_s18 = int_to_ptr.vmem [resolvable:$true] %s28_s18 }
   0x7   :  { %31 = dma.hbm_to_vmem [thread:$0]  %s27_s16, 1024, %s29_s18, [#allocation6]  }
   0x8   :  { %405 = dma.done.wait [#allocation3], 1024  }
   0x9   :  { %406 = vsyncadd [#allocation3], 4294966272 }
   0xa   :  { %407 = dma.done.wait [#allocation6], 1024  }
   0xb   :  { %408 = vsyncadd [#allocation6], 4294966272  ;;  %v40_v0 = vld [vmem:[#allocation2] sm:$0xff]  ;;  %v41_v2 = vld [vmem:[#allocation2 + $0x8] sm:$0xff]  ;;  %s413_s0 = smov [#allocation7]   ;;  %s271_s21 = sshll.u32 %s600_s2, 4  ;;  %s272_s21 = int_to_ptr.hbm [resolvable:$true] %s271_s21 }
   0xc   :  { %v48_v1 = vld [vmem:[#allocation5] sm:$0xff]  ;;  %v49_v5 = vld [vmem:[#allocation5 + $0x8] sm:$0xff]  ;;  %v42_v6 = vld [vmem:[#allocation2 + $0x10] sm:$0xff]  ;;  %s269_s1 = sshll.u32 %s413_s0, 4  ;;  %s270_s1 = int_to_ptr.vmem [resolvable:$true] %s269_s1 }
   0xd   :  { %v56_v3 = vsub.f32 %v40_v0, %v48_v1  ;;  %v64_v4 = vmul.f32 1.442695, %v48_v1  ;;  %v50_v7 = vld [vmem:[#allocation5 + $0x10] sm:$0xff]  ;;  %v57_v8 = vsub.f32 %v41_v2, %v49_v5  ;;  %v66_v9 = vmul.f32 1.442695, %v49_v5  ;;  %v43_v11 = vld [vmem:[#allocation2 + $0x18] sm:$0xff] }
   0xe   :  { %v58_v10 = vsub.f32 %v42_v6, %v50_v7  ;;  %v51_v12 = vld [vmem:[#allocation5 + $0x18] sm:$0xff]  ;;  %v68_v14 = vmul.f32 1.442695, %v50_v7  ;;  %v44_v16 = vld [vmem:[#allocation2 + $0x20] sm:$0xff]  ;;  %v45_v25 = vld [vmem:[#allocation2 + $0x28] sm:$0xff] }
   0xf   :  { %v96_v13 = vsub.f32 0.2, %v56_v3  ;;  %v59_v15 = vsub.f32 %v43_v11, %v51_v12  ;;  %v52_v17 = vld [vmem:[#allocation5 + $0x20] sm:$0xff]  ;;  %v97_v18 = vsub.f32 0.2, %v57_v8  ;;  %285 = vpow2.f32 %v64_v4  ;;  %v53_v26 = vld [vmem:[#allocation5 + $0x28] sm:$0xff] }
  0x10   :  { %v98_v20 = vsub.f32 0.2, %v58_v10  ;;  %v70_v21 = vmul.f32 1.442695, %v51_v12  ;;  %287 = vpow2.f32 %v66_v9  ;;  %v60_v24 = vsub.f32 %v44_v16, %v52_v17  ;;  %v46_v34 = vld [vmem:[#allocation2 + $0x30] sm:$0xff]  ;;  %v47_v38 = vld [vmem:[#allocation2 + $0x38] sm:$0xff] }
  0x11   :  { %v104_v19 = vmul.f32 5.0, %v96_v13  ;;  %v105_v22 = vmul.f32 5.0, %v97_v18  ;;  %v99_v23 = vsub.f32 0.2, %v59_v15  ;;  %289 = vpow2.f32 %v68_v14  ;;  %v435_v37 = vld [vmem:[#allocation5 + $0x30] sm:$0xff]  ;;  %v437_v39 = vld [vmem:[#allocation5 + $0x38] sm:$0xff] }
  0x12   :  { %v106_v28 = vmul.f32 5.0, %v98_v20  ;;  %291 = vpow2.f32 %v70_v21  ;;  %v100_v31 = vsub.f32 0.2, %v60_v24  ;;  %v61_v33 = vsub.f32 %v45_v25, %v53_v26 }
  0x13   :  { %v112_v27 = vmul.f32 1.442695, %v104_v19  ;;  %v114_v29 = vmul.f32 1.442695, %v105_v22  ;;  %v107_v30 = vmul.f32 5.0, %v99_v23  ;;  %v80_v43 = vmul.f32 %v56_v3, %v56_v3 }
  0x14   :  { %v116_v32 = vmul.f32 1.442695, %v106_v28  ;;  %v108_v36 = vmul.f32 5.0, %v100_v31  ;;  %v101_v41 = vsub.f32 0.2, %v61_v33  ;;  %v440_v48 = vsub.f32 %v46_v34, %v435_v37 }
  0x15   :  { %293 = vpow2.f32 %v112_v27  ;;  %v118_v35 = vmul.f32 1.442695, %v107_v30  ;;  %v286_v40 = vpop.eup %285  ;;  %v72_v44 = vmul.f32 1.442695, %v52_v17  ;;  %v443_v49 = vsub.f32 %v47_v38, %v437_v39 }
  0x16   :  { %295 = vpow2.f32 %v114_v29  ;;  %v288_v42 = vpop.eup %287  ;;  %v120_v45 = vmul.f32 1.442695, %v108_v36  ;;  %v109_v47 = vmul.f32 5.0, %v101_v41  ;;  %v81_v51 = vmul.f32 %v57_v8, %v57_v8 }
  0x17   :  { %297 = vpow2.f32 %v116_v32  ;;  %v290_v46 = vpop.eup %289  ;;  %v82_v52 = vmul.f32 %v58_v10, %v58_v10  ;;  %v83_v54 = vmul.f32 %v59_v15, %v59_v15  ;;  %v84_v55 = vmul.f32 %v60_v24, %v60_v24 }
  0x18   :  { %299 = vpow2.f32 %v118_v35  ;;  %v292_v50 = vpop.eup %291  ;;  %v122_v56 = vmul.f32 1.442695, %v109_v47  ;;  %v445_v58 = vmul.f32 %v286_v40, %v80_v43  ;;  %v74_v60 = vmul.f32 1.442695, %v53_v26 }
  0x19   :  { %301 = vpow2.f32 %v120_v45  ;;  %v102_v63 = vsub.f32 0.2, %v440_v48  ;;  %v103_v0 = vsub.f32 0.2, %v443_v49  ;;  %v454_v2 = vmul.f32 %v288_v42, %v81_v51 }
  0x1a   :  { %303 = vpow2.f32 %v72_v44  ;;  %v456_v3 = vmul.f32 %v290_v46, %v82_v52  ;;  %v458_v4 = vmul.f32 %v61_v33, %v61_v33  ;;  %v463_v7 = vmul.f32 %v292_v50, %v83_v54 }
  0x1b   :  { %v294_v53 = vpop.eup %293  ;;  %305 = vpow2.f32 %v122_v56  ;;  %v110_v14 = vmul.f32 5.0, %v102_v63  ;;  %v473_v15 = vmul.f32 5.0, %v103_v0  ;;  %v76_v41 = vmul.f32 1.442695, %v435_v37 }
  0x1c   :  { %v296_v57 = vpop.eup %295  ;;  %v447_v59 = vadd.f32 1.0, %v294_v53  ;;  %v86_v37 = vmul.f32 %v440_v48, %v440_v48  ;;  %v78_v50 = vmul.f32 1.442695, %v437_v39  ;;  %v87_v39 = vmul.f32 %v443_v49, %v443_v49 }
  0x1d   :  { %v298_v61 = vpop.eup %297  ;;  %v449_v62 = vadd.f32 1.0, %v296_v57  ;;  %v124_v46 = vmul.f32 1.442695, %v110_v14 }
  0x1e   :  { %v300_v1 = vpop.eup %299  ;;  %307 = vrcp.f32 %v447_v59  ;;  %v145_v5 = vand.u32 2147483647, %v447_v59  ;;  %v147_v6 = vand.u32 2147483648, %v447_v59  ;;  %v466_v10 = vadd.f32 1.0, %v298_v61 }
  0x1f   :  { %309 = vrcp.f32 %v449_v62  ;;  %v302_v8 = vpop.eup %301  ;;  %v160_v9 = vand.u32 2147483647, %v449_v62  ;;  %v468_v11 = vadd.f32 1.0, %v300_v1  ;;  %v162_v12 = vand.u32 2147483648, %v449_v62 }
  0x20   :  { %311 = vpow2.f32 %v74_v60  ;;  %v471_v13 = vadd.f32 1.0, %v302_v8  ;;  %v304_v16 = vpop.eup %303  ;;  %vm141_vm0 = vweird.f32 %v447_v59  ;;  %vm156_vm1 = vweird.f32 %v449_v62 }
  0x21   :  { %313 = vrcp.f32 %v466_v10  ;;  %v177_v17 = vand.u32 2147483648, %v466_v10  ;;  %v306_v18 = vpop.eup %305  ;;  %vm479_vm2 = vcmp.eq.f32.partialorder %v145_v5, 8.507059e+37  ;;  %v148_v20 = vor.u32 1.1754944e-38, %v147_v6 }
  0x22   :  { %v175_v21 = vand.u32 2147483647, %v466_v10  ;;  %315 = vrcp.f32 %v468_v11  ;;  %vm485_vm3 = vcmp.eq.f32.partialorder %v160_v9, 8.507059e+37  ;;  %v190_v24 = vand.u32 2147483647, %v468_v11 }
  0x23   :  { %v192_v25 = vand.u32 2147483648, %v468_v11  ;;  %317 = vrcp.f32 %v471_v13  ;;  %v163_v28 = vor.u32 1.1754944e-38, %v162_v12  ;;  %vm171_vm4 = vweird.f32 %v466_v10 }
  0x24   :  { %v308_v22 = vpop.eup %307  ;;  %v494_v29 = vmul.f32 %v304_v16, %v84_v55  ;;  %v178_v32 = vor.u32 1.1754944e-38, %v177_v17  ;;  %vm186_vm5 = vweird.f32 %v468_v11  ;;  %v205_v33 = vand.u32 2147483647, %v471_v13 }
  0x25   :  { %v310_v26 = vpop.eup %309  ;;  %v137_v27 = vmul.f32 %v308_v22, %v447_v59  ;;  %vm142_vm6 = vweird.f32 %v308_v22  ;;  %vm501_vm7 = vcmp.eq.f32.partialorder %v175_v21, 8.507059e+37  ;;  %vm201_vm8 = vweird.f32 %v471_v13 }
  0x26   :  { %v496_v30 = vpop.eup %311  ;;  %v152_v31 = vmul.f32 %v310_v26, %v449_v62  ;;  %v506_v36 = vadd.f32 1.0, %v306_v18  ;;  %vm157_vm9 = vweird.f32 %v310_v26  ;;  %vm508_vm10 = vcmp.eq.f32.partialorder %v190_v24, 8.507059e+37  ;;  %vm517_vm11 = vmor %vm141_vm0, %vm142_vm6 }
  0x27   :  { %v138_v34 = vsub.f32 1.0, %v137_v27  ;;  %v314_v38 = vpop.eup %313  ;;  %v193_v42 = vor.u32 1.1754944e-38, %v192_v25  ;;  %vm522_vm12 = vcmp.eq.f32.partialorder %v205_v33, 8.507059e+37  ;;  %v207_v54 = vand.u32 2147483648, %v471_v13  ;;  %vm530_vm13 = vmor %vm156_vm1, %vm157_vm9 }
  0x28   :  { %v153_v40 = vsub.f32 1.0, %v152_v31  ;;  %v316_v43 = vpop.eup %315  ;;  %v167_v45 = vmul.f32 %v314_v38, %v466_v10  ;;  %319 = vrcp.f32 %v506_v36  ;;  %vm172_vm14 = vweird.f32 %v314_v38 }
  0x29   :  { %v139_v44 = vmul.f32 %v308_v22, %v138_v34  ;;  %v318_v47 = vpop.eup %317  ;;  %v182_v52 = vmul.f32 %v316_v43, %v468_v11  ;;  %vm187_vm15 = vweird.f32 %v316_v43  ;;  %321 = vpow2.f32 %v124_v46  ;;  %vm543_vm1 = vmor %vm171_vm4, %vm172_vm14 }
  0x2a   :  { %v154_v51 = vmul.f32 %v310_v26, %v153_v40  ;;  %v168_v57 = vsub.f32 1.0, %v167_v45  ;;  %v197_v59 = vmul.f32 %v318_v47, %v471_v13  ;;  %vm202_vm0 = vweird.f32 %v318_v47 }
  0x2b   :  { %v140_v55 = vadd.f32 %v308_v22, %v139_v44  ;;  %v183_v61 = vsub.f32 1.0, %v182_v52  ;;  %v208_v9 = vor.u32 1.1754944e-38, %v207_v54  ;;  %vm561_vm4 = vmor %vm201_vm8, %vm202_vm0  ;;  %v220_v23 = vand.u32 2147483647, %v506_v36 }
  0x2c   :  { %v155_v60 = vadd.f32 %v310_v26, %v154_v51  ;;  %v169_v0 = vmul.f32 %v314_v38, %v168_v57  ;;  %v198_v1 = vsub.f32 1.0, %v197_v59  ;;  %v126_v33 = vmul.f32 1.442695, %v473_v15 }
  0x2d   :  { %v144_v63 = vsel %vm517_vm11, %v308_v22, %v140_v55  ;;  %v184_v8 = vmul.f32 %v316_v43, %v183_v61  ;;  %v93_v15 = vmul.f32 %v496_v30, %v458_v4 }
  0x2e   :  { %v149_v62 = vsel %vm479_vm2, %v148_v20, %v144_v63  ;;  %v159_v5 = vsel %vm530_vm13, %v310_v26, %v155_v60  ;;  %v320_v12 = vpop.eup %319  ;;  %v170_v17 = vadd.f32 %v314_v38, %v169_v0  ;;  %vm553_vm2 = vmor %vm186_vm5, %vm187_vm15  ;;  %v199_v10 = vmul.f32 %v318_v47, %v198_v1 }
  0x2f   :  { %v150_v14 = vmul.f32 %v149_v62, %v445_v58  ;;  %v164_v16 = vsel %vm485_vm3, %v163_v28, %v159_v5  ;;  %v185_v20 = vadd.f32 %v316_v43, %v184_v8  ;;  %v212_v21 = vmul.f32 %v320_v12, %v506_v36  ;;  %v322_v26 = vpop.eup %321 }
  0x30   :  { %v165_v19 = vmul.f32 %v164_v16, %v454_v2  ;;  %vm216_vm3 = vweird.f32 %v506_v36  ;;  %v174_v11 = vsel %vm543_vm1, %v314_v38, %v170_v17  ;;  %v200_v22 = vadd.f32 %v318_v47, %v199_v10 }
  0x31   :  { %256 = vst [vmem:[#allocation7] sm:$0xff] %v150_v14  ;;  %v222_v2 = vand.u32 2147483648, %v506_v36  ;;  %v179_v13 = vsel %vm501_vm7, %v178_v32, %v174_v11  ;;  %v189_v24 = vsel %vm553_vm2, %v316_v43, %v185_v20  ;;  %v213_v25 = vsub.f32 1.0, %v212_v21 }
  0x32   :  { %257 = vst [vmem:[#allocation7 + $0x8] sm:$0xff] %v165_v19  ;;  %vm217_vm5 = vweird.f32 %v320_v12  ;;  %v180_v27 = vmul.f32 %v179_v13, %v456_v3  ;;  %v194_v28 = vsel %vm508_vm10, %v193_v42, %v189_v24  ;;  %v204_v31 = vsel %vm561_vm4, %v318_v47, %v200_v22 }
  0x33   :  { %v195_v34 = vmul.f32 %v194_v28, %v463_v7  ;;  %v209_v32 = vsel %vm522_vm12, %v208_v9, %v204_v31  ;;  %v214_v35 = vmul.f32 %v320_v12, %v213_v25  ;;  %v134_v38 = vadd.f32 1.0, %v322_v26  ;;  %vm218_vm6 = vmor %vm216_vm3, %vm217_vm5 }
  0x34   :  { %258 = vst [vmem:[#allocation7 + $0x10] sm:$0xff] %v180_v27  ;;  %v210_v40 = vmul.f32 %v209_v32, %v494_v29  ;;  %v223_v3 = vor.u32 1.1754944e-38, %v222_v2  ;;  %323 = vpow2.f32 %v126_v33  ;;  %vm221_vm7 = vcmp.eq.f32.partialorder %v220_v23, 8.507059e+37 }
  0x35   :  { %259 = vst [vmem:[#allocation7 + $0x18] sm:$0xff] %v195_v34  ;;  %v215_v7 = vadd.f32 %v320_v12, %v214_v35  ;;  %325 = vrcp.f32 %v134_v38  ;;  %v237_v47 = vand.u32 2147483648, %v134_v38  ;;  %vm231_vm8 = vweird.f32 %v134_v38 }
  0x36   :  { %260 = vst [vmem:[#allocation7 + $0x20] sm:$0xff] %v210_v40  ;;  %327 = vpow2.f32 %v76_v41  ;;  %v235_v30 = vand.u32 2147483647, %v134_v38 }
  0x37   :  { %v219_v42 = vsel %vm218_vm6, %v320_v12, %v215_v7  ;;  %v238_v53 = vor.u32 1.1754944e-38, %v237_v47 }
  0x38   :  { %v224_v43 = vsel %vm221_vm7, %v223_v3, %v219_v42  ;;  %vm236_vm11 = vcmp.eq.f32.partialorder %v235_v30, 8.507059e+37 }
  0x39   :  { %v225_v44 = vmul.f32 %v224_v43, %v93_v15 }
  0x3a   :  { %v324_v29 = vpop.eup %323 }
  0x3b   :  { %v326_v45 = vpop.eup %325  ;;  %261 = vst [vmem:[#allocation7 + $0x28] sm:$0xff] %v225_v44  ;;  %v135_v36 = vadd.f32 1.0, %v324_v29 }
  0x3c   :  { %v227_v46 = vmul.f32 %v326_v45, %v134_v38  ;;  %vm232_vm9 = vweird.f32 %v326_v45  ;;  %v328_v51 = vpop.eup %327 }
  0x3d   :  { %329 = vrcp.f32 %v135_v36  ;;  %vm233_vm10 = vmor %vm231_vm8, %vm232_vm9  ;;  %v94_v54 = vmul.f32 %v328_v51, %v86_v37  ;;  %vm246_vm12 = vweird.f32 %v135_v36  ;;  %v252_v60 = vand.u32 2147483648, %v135_v36 }
  0x3e   :  { %v228_v4 = vsub.f32 1.0, %v227_v46  ;;  %331 = vpow2.f32 %v78_v50  ;;  %v250_v0 = vand.u32 2147483647, %v135_v36 }
  0x3f   :  { %v253_v5 = vor.u32 1.1754944e-38, %v252_v60 }
  0x40   :  { %v229_v52 = vmul.f32 %v326_v45, %v228_v4  ;;  %vm251_vm15 = vcmp.eq.f32.partialorder %v250_v0, 8.507059e+37 }
  0x42   :  { %v230_v55 = vadd.f32 %v326_v45, %v229_v52 }
  0x43   :  { %v330_v56 = vpop.eup %329 }
  0x44   :  { %v234_v57 = vsel %vm233_vm10, %v326_v45, %v230_v55  ;;  %v242_v59 = vmul.f32 %v330_v56, %v135_v36  ;;  %vm247_vm13 = vweird.f32 %v330_v56  ;;  %v332_v1 = vpop.eup %331 }
  0x45   :  { %v239_v48 = vsel %vm236_vm11, %v238_v53, %v234_v57  ;;  %vm248_vm14 = vmor %vm246_vm12, %vm247_vm13  ;;  %v95_v6 = vmul.f32 %v332_v1, %v87_v39 }
  0x46   :  { %v240_v61 = vmul.f32 %v239_v48, %v94_v54  ;;  %v243_v63 = vsub.f32 1.0, %v242_v59 }
  0x48   :  { %262 = vst [vmem:[#allocation7 + $0x30] sm:$0xff] %v240_v61  ;;  %v244_v62 = vmul.f32 %v330_v56, %v243_v63 }
  0x4a   :  { %v245_v8 = vadd.f32 %v330_v56, %v244_v62 }
  0x4c   :  { %v249_v49 = vsel %vm248_vm14, %v330_v56, %v245_v8 }
  0x4d   :  { %v254_v9 = vsel %vm251_vm15, %v253_v5, %v249_v49 }
  0x4e   :  { %v255_v12 = vmul.f32 %v254_v9, %v95_v6 }
  0x50   :  { %263 = vst [vmem:[#allocation7 + $0x38] sm:$0xff] %v255_v12 }
  0x51   :  { %274 = dma.vmem_to_hbm [thread:$0]  %s270_s1, 1024, %s272_s21, [#allocation4]  }
  0x52   :  { %409 = dma.done.wait [#allocation4], 1024  }
  0x53   :  { %410 = vsyncadd [#allocation4], 4294966272 }
  0x54   :  { %279 = vsyncpa [#allocation3], 1 }
  0x55   :  { %280 = vsyncpa [#allocation6], 1 }
  0x56   :  { %281 = vsyncpa [#allocation4], 1 }

</bundles_post_ra>
